<compile_context>
chip_gen: v7x
topology: tpu7x:2x2x1
jax: 0.10.0
libtpu: 0.0.40
codegen_flags: <defaults>
</compile_context>

<pallas_src>
import jax
import jax.numpy as jnp
from jax import lax
from jax.experimental import pallas as pl
from jax.experimental.pallas import tpu as pltpu
import numpy as np


def agent_kernel(x_ref, wx_ref, wh_ref, b_ref, wd_ref, bd_ref, out_ref):
    T = x_ref.shape[0]
    H = wh_ref.shape[0]

    # Hoisted input projection + bias: (T, 4H).  Columns already ordered
    # [g | i | f | o] with the i/f/o columns pre-scaled by 0.5 (wrapper-side).
    xw = (jnp.dot(x_ref[...], wx_ref[...], preferred_element_type=jnp.float32)
          + b_ref[...])                                               # (T, 4H)

    wh = wh_ref[...]                                                  # (H, 4H)

    def cell(gates, h_prev, c_prev, use_c):
        # One EUP pass over the full (1,4H) vreg.
        y = jnp.tanh(gates)
        # sigmoid(x) = 0.5*tanh(x/2) + 0.5 ; i/f/o lanes carry x/2 already.
        yh = 0.5 * y + 0.5
        g = y[:, 0 * H:1 * H]          # offset-0 slice: no lane rotate
        i = yh[:, 1 * H:2 * H]
        f = yh[:, 2 * H:3 * H]
        o = yh[:, 3 * H:4 * H]
        if use_c:
            c_new = f * c_prev + i * g
        else:
            c_new = i * g              # peeled step: c_prev == 0
        h_new = o * jnp.tanh(c_new)
        return h_new, c_new

    # Peeled step 0: h0 = c0 = 0 -> gates = xw[0]; no recurrent matmul, no f*c.
    h, c = cell(xw[0:1, :], None, None, use_c=False)

    # Remaining steps: only h @ Wh stays on the serial critical path.
    for t in range(1, T):
        gates = xw[t:t + 1, :] + jnp.dot(h, wh,
                                         preferred_element_type=jnp.float32)
        h, c = cell(gates, h, c, use_c=True)

    # last hidden state -> ReLU -> dense -> softmax
    h_relu = jnp.maximum(h, 0.0)                                      # (1, H)
    logits = (jnp.dot(h_relu, wd_ref[...], preferred_element_type=jnp.float32)
              + bd_ref[...])                                          # (1, D)
    m = jnp.max(logits, axis=-1, keepdims=True)
    e = jnp.exp(logits - m)
    inv = pl.reciprocal(jnp.sum(e, axis=-1, keepdims=True), approx=False)
    out_ref[...] = e * inv


def prepare_params(params):
    """One-time weight prep: transpose, fold biases, permute gate columns to
    [g|i|f|o] and pre-scale the i/f/o columns by 0.5 (sigmoid-via-tanh trick)."""
    w_ih, w_hh, b_ih, b_hh, w_dense, b_dense = params
    H = w_hh.shape[1]

    def reorder_scale(m4h):  # (..., 4H) in PyTorch gate order [i, f, g, o]
        i = m4h[..., 0 * H:1 * H]
        f = m4h[..., 1 * H:2 * H]
        g = m4h[..., 2 * H:3 * H]
        o = m4h[..., 3 * H:4 * H]
        return jnp.concatenate([g, 0.5 * i, 0.5 * f, 0.5 * o], axis=-1)

    wx = reorder_scale(w_ih.T)                            # (F, 4H)
    wh = reorder_scale(w_hh.T)                            # (H, 4H)
    b = reorder_scale((b_ih + b_hh).reshape(1, 4 * H))    # (1, 4H)
    wd = w_dense.T                                        # (H, D)
    bd = b_dense.reshape(1, -1)                           # (1, D)
    return (wx, wh, b, wd, bd)


@jax.jit
def agent_model_forward(x, prepared):
    """x: (T, F) float32 (batch=1 squeezed).  Returns (D,) softmax probabilities."""
    wx, wh, b, wd, bd = prepared
    D = wd.shape[1]
    vmem = pl.BlockSpec(memory_space=pltpu.MemorySpace.VMEM)
    out = pl.pallas_call(
        agent_kernel,
        out_shape=jax.ShapeDtypeStruct((1, D), jnp.float32),
        in_specs=[vmem] * 6,
        out_specs=vmem,
    )(x, wx, wh, b, wd, bd)
    return out[0]


def reference_forward(x, params):
    """Pure-JAX reference mirroring torch semantics (B=1)."""
    w_ih, w_hh, b_ih, b_hh, w_dense, b_dense = params
    H = w_hh.shape[1]
    h = jnp.zeros((H,), jnp.float32)
    c = jnp.zeros((H,), jnp.float32)
    for t in range(x.shape[0]):
        gates = w_ih @ x[t] + b_ih + w_hh @ h + b_hh
        i = jax.nn.sigmoid(gates[0 * H:1 * H])
        f = jax.nn.sigmoid(gates[1 * H:2 * H])
        g = jnp.tanh(gates[2 * H:3 * H])
        o = jax.nn.sigmoid(gates[3 * H:4 * H])
        c = f * c + i * g
        h = o * jnp.tanh(c)
    h = jnp.maximum(h, 0.0)
    logits = w_dense @ h + b_dense
    return jax.nn.softmax(logits)


if __name__ == "__main__":
    # Small shapes consistent with the module: seq=8, feature_len=16,
    # lstm_len=32, dense_len=16, batch=1 (the module's squeeze()[-1,:] assumes B=1).
    T, F, H, D = 8, 16, 32, 16

    key = jax.random.PRNGKey(0)
    ks = jax.random.split(key, 7)
    bound = 1.0 / np.sqrt(H)
    w_ih = jax.random.uniform(ks[0], (4 * H, F), jnp.float32, -bound, bound)
    w_hh = jax.random.uniform(ks[1], (4 * H, H), jnp.float32, -bound, bound)
    b_ih = jax.random.uniform(ks[2], (4 * H,), jnp.float32, -bound, bound)
    b_hh = jax.random.uniform(ks[3], (4 * H,), jnp.float32, -bound, bound)
    w_dense = jax.random.uniform(ks[4], (D, H), jnp.float32, -bound, bound)
    b_dense = jax.random.uniform(ks[5], (D,), jnp.float32, -bound, bound)
    params = (w_ih, w_hh, b_ih, b_hh, w_dense, b_dense)

    x = jax.random.normal(ks[6], (T, F), jnp.float32)   # batch=1 sequence

    prepared = prepare_params(params)                   # one-time weight prep
    out = agent_model_forward(x, prepared)
    jax.block_until_ready(out)

    ref = reference_forward(x, params)
    assert out.shape == (D,)
    assert np.allclose(np.asarray(out), np.asarray(ref), atol=1e-5, rtol=1e-5)

    print("KERNEL_OK")
</pallas_src>

<mosaic_0001>
module attributes {stable_mosaic.version = 11 : i64} {
  func.func @agent_kernel(%arg0: memref<8x16xf32, #tpu.memory_space<vmem>>, %arg1: memref<16x128xf32, #tpu.memory_space<vmem>>, %arg2: memref<32x128xf32, #tpu.memory_space<vmem>>, %arg3: memref<1x128xf32, #tpu.memory_space<vmem>>, %arg4: memref<32x16xf32, #tpu.memory_space<vmem>>, %arg5: memref<1x16xf32, #tpu.memory_space<vmem>>, %arg6: memref<1x16xf32, #tpu.memory_space<vmem>>) attributes {dimension_semantics = [], scalar_prefetch = 0 : i64, scratch_operands = 0 : i64, tpu.core_type = #tpu.core_type<tc>} {
    %c0 = arith.constant 0 : index
    %c0_0 = arith.constant 0 : index
    %0 = vector.load %arg0[%c0, %c0_0] : memref<8x16xf32, #tpu.memory_space<vmem>>, vector<8x16xf32>
    %c0_1 = arith.constant 0 : index
    %c0_2 = arith.constant 0 : index
    %1 = vector.load %arg1[%c0_1, %c0_2] : memref<16x128xf32, #tpu.memory_space<vmem>>, vector<16x128xf32>
    %cst = arith.constant dense<0.000000e+00> : vector<8x128xf32>
    %2 = tpu.matmul %0, %1, %cst {dimension_numbers = #tpu.dot_dimension_numbers<[1], [0], [0], [1], [0, 0, 1, 1], [], []>} : vector<8x16xf32>, vector<16x128xf32>, vector<8x128xf32> -> vector<8x128xf32>
    %c0_3 = arith.constant 0 : index
    %c0_4 = arith.constant 0 : index
    %3 = vector.load %arg3[%c0_3, %c0_4] : memref<1x128xf32, #tpu.memory_space<vmem>>, vector<1x128xf32>
    %4 = vector.broadcast %3 : vector<1x128xf32> to vector<8x128xf32>
    %5 = arith.addf %2, %4 : vector<8x128xf32>
    %c0_5 = arith.constant 0 : index
    %c0_6 = arith.constant 0 : index
    %6 = vector.load %arg2[%c0_5, %c0_6] : memref<32x128xf32, #tpu.memory_space<vmem>>, vector<32x128xf32>
    %7 = vector.extract_strided_slice %5 {offsets = [0, 0], sizes = [1, 128], strides = [1, 1]} : vector<8x128xf32> to vector<1x128xf32>
    %8 = math.tanh %7 : vector<1x128xf32>
    %cst_7 = arith.constant 5.000000e-01 : f32
    %9 = vector.broadcast %cst_7 : f32 to vector<1x128xf32>
    %10 = arith.mulf %9, %8 : vector<1x128xf32>
    %cst_8 = arith.constant 5.000000e-01 : f32
    %11 = vector.broadcast %cst_8 : f32 to vector<1x128xf32>
    %12 = arith.addf %10, %11 : vector<1x128xf32>
    %13 = vector.extract_strided_slice %8 {offsets = [0, 0], sizes = [1, 32], strides = [1, 1]} : vector<1x128xf32> to vector<1x32xf32>
    %14 = vector.extract_strided_slice %12 {offsets = [0, 32], sizes = [1, 32], strides = [1, 1]} : vector<1x128xf32> to vector<1x32xf32>
    %15 = vector.extract_strided_slice %12 {offsets = [0, 96], sizes = [1, 32], strides = [1, 1]} : vector<1x128xf32> to vector<1x32xf32>
    %16 = arith.mulf %14, %13 : vector<1x32xf32>
    %17 = math.tanh %16 : vector<1x32xf32>
    %18 = arith.mulf %15, %17 : vector<1x32xf32>
    %19 = vector.extract_strided_slice %5 {offsets = [1, 0], sizes = [1, 128], strides = [1, 1]} : vector<8x128xf32> to vector<1x128xf32>
    %cst_9 = arith.constant dense<0.000000e+00> : vector<1x128xf32>
    %20 = tpu.matmul %18, %6, %cst_9 {dimension_numbers = #tpu.dot_dimension_numbers<[1], [0], [0], [1], [0, 0, 1, 1], [], []>} : vector<1x32xf32>, vector<32x128xf32>, vector<1x128xf32> -> vector<1x128xf32>
    %21 = arith.addf %19, %20 : vector<1x128xf32>
    %22 = math.tanh %21 : vector<1x128xf32>
    %cst_10 = arith.constant 5.000000e-01 : f32
    %23 = vector.broadcast %cst_10 : f32 to vector<1x128xf32>
    %24 = arith.mulf %23, %22 : vector<1x128xf32>
    %cst_11 = arith.constant 5.000000e-01 : f32
    %25 = vector.broadcast %cst_11 : f32 to vector<1x128xf32>
    %26 = arith.addf %24, %25 : vector<1x128xf32>
    %27 = vector.extract_strided_slice %22 {offsets = [0, 0], sizes = [1, 32], strides = [1, 1]} : vector<1x128xf32> to vector<1x32xf32>
    %28 = vector.extract_strided_slice %26 {offsets = [0, 32], sizes = [1, 32], strides = [1, 1]} : vector<1x128xf32> to vector<1x32xf32>
    %29 = vector.extract_strided_slice %26 {offsets = [0, 64], sizes = [1, 32], strides = [1, 1]} : vector<1x128xf32> to vector<1x32xf32>
    %30 = vector.extract_strided_slice %26 {offsets = [0, 96], sizes = [1, 32], strides = [1, 1]} : vector<1x128xf32> to vector<1x32xf32>
    %31 = arith.mulf %29, %16 : vector<1x32xf32>
    %32 = arith.mulf %28, %27 : vector<1x32xf32>
    %33 = arith.addf %31, %32 : vector<1x32xf32>
    %34 = math.tanh %33 : vector<1x32xf32>
    %35 = arith.mulf %30, %34 : vector<1x32xf32>
    %36 = vector.extract_strided_slice %5 {offsets = [2, 0], sizes = [1, 128], strides = [1, 1]} : vector<8x128xf32> to vector<1x128xf32>
    %cst_12 = arith.constant dense<0.000000e+00> : vector<1x128xf32>
    %37 = tpu.matmul %35, %6, %cst_12 {dimension_numbers = #tpu.dot_dimension_numbers<[1], [0], [0], [1], [0, 0, 1, 1], [], []>} : vector<1x32xf32>, vector<32x128xf32>, vector<1x128xf32> -> vector<1x128xf32>
    %38 = arith.addf %36, %37 : vector<1x128xf32>
    %39 = math.tanh %38 : vector<1x128xf32>
    %cst_13 = arith.constant 5.000000e-01 : f32
    %40 = vector.broadcast %cst_13 : f32 to vector<1x128xf32>
    %41 = arith.mulf %40, %39 : vector<1x128xf32>
    %cst_14 = arith.constant 5.000000e-01 : f32
    %42 = vector.broadcast %cst_14 : f32 to vector<1x128xf32>
    %43 = arith.addf %41, %42 : vector<1x128xf32>
    %44 = vector.extract_strided_slice %39 {offsets = [0, 0], sizes = [1, 32], strides = [1, 1]} : vector<1x128xf32> to vector<1x32xf32>
    %45 = vector.extract_strided_slice %43 {offsets = [0, 32], sizes = [1, 32], strides = [1, 1]} : vector<1x128xf32> to vector<1x32xf32>
    %46 = vector.extract_strided_slice %43 {offsets = [0, 64], sizes = [1, 32], strides = [1, 1]} : vector<1x128xf32> to vector<1x32xf32>
    %47 = vector.extract_strided_slice %43 {offsets = [0, 96], sizes = [1, 32], strides = [1, 1]} : vector<1x128xf32> to vector<1x32xf32>
    %48 = arith.mulf %46, %33 : vector<1x32xf32>
    %49 = arith.mulf %45, %44 : vector<1x32xf32>
    %50 = arith.addf %48, %49 : vector<1x32xf32>
    %51 = math.tanh %50 : vector<1x32xf32>
    %52 = arith.mulf %47, %51 : vector<1x32xf32>
    %53 = vector.extract_strided_slice %5 {offsets = [3, 0], sizes = [1, 128], strides = [1, 1]} : vector<8x128xf32> to vector<1x128xf32>
    %cst_15 = arith.constant dense<0.000000e+00> : vector<1x128xf32>
    %54 = tpu.matmul %52, %6, %cst_15 {dimension_numbers = #tpu.dot_dimension_numbers<[1], [0], [0], [1], [0, 0, 1, 1], [], []>} : vector<1x32xf32>, vector<32x128xf32>, vector<1x128xf32> -> vector<1x128xf32>
    %55 = arith.addf %53, %54 : vector<1x128xf32>
    %56 = math.tanh %55 : vector<1x128xf32>
    %cst_16 = arith.constant 5.000000e-01 : f32
    %57 = vector.broadcast %cst_16 : f32 to vector<1x128xf32>
    %58 = arith.mulf %57, %56 : vector<1x128xf32>
    %cst_17 = arith.constant 5.000000e-01 : f32
    %59 = vector.broadcast %cst_17 : f32 to vector<1x128xf32>
    %60 = arith.addf %58, %59 : vector<1x128xf32>
    %61 = vector.extract_strided_slice %56 {offsets = [0, 0], sizes = [1, 32], strides = [1, 1]} : vector<1x128xf32> to vector<1x32xf32>
    %62 = vector.extract_strided_slice %60 {offsets = [0, 32], sizes = [1, 32], strides = [1, 1]} : vector<1x128xf32> to vector<1x32xf32>
    %63 = vector.extract_strided_slice %60 {offsets = [0, 64], sizes = [1, 32], strides = [1, 1]} : vector<1x128xf32> to vector<1x32xf32>
    %64 = vector.extract_strided_slice %60 {offsets = [0, 96], sizes = [1, 32], strides = [1, 1]} : vector<1x128xf32> to vector<1x32xf32>
    %65 = arith.mulf %63, %50 : vector<1x32xf32>
    %66 = arith.mulf %62, %61 : vector<1x32xf32>
    %67 = arith.addf %65, %66 : vector<1x32xf32>
    %68 = math.tanh %67 : vector<1x32xf32>
    %69 = arith.mulf %64, %68 : vector<1x32xf32>
    %70 = vector.extract_strided_slice %5 {offsets = [4, 0], sizes = [1, 128], strides = [1, 1]} : vector<8x128xf32> to vector<1x128xf32>
    %cst_18 = arith.constant dense<0.000000e+00> : vector<1x128xf32>
    %71 = tpu.matmul %69, %6, %cst_18 {dimension_numbers = #tpu.dot_dimension_numbers<[1], [0], [0], [1], [0, 0, 1, 1], [], []>} : vector<1x32xf32>, vector<32x128xf32>, vector<1x128xf32> -> vector<1x128xf32>
    %72 = arith.addf %70, %71 : vector<1x128xf32>
    %73 = math.tanh %72 : vector<1x128xf32>
    %cst_19 = arith.constant 5.000000e-01 : f32
    %74 = vector.broadcast %cst_19 : f32 to vector<1x128xf32>
    %75 = arith.mulf %74, %73 : vector<1x128xf32>
    %cst_20 = arith.constant 5.000000e-01 : f32
    %76 = vector.broadcast %cst_20 : f32 to vector<1x128xf32>
    %77 = arith.addf %75, %76 : vector<1x128xf32>
    %78 = vector.extract_strided_slice %73 {offsets = [0, 0], sizes = [1, 32], strides = [1, 1]} : vector<1x128xf32> to vector<1x32xf32>
    %79 = vector.extract_strided_slice %77 {offsets = [0, 32], sizes = [1, 32], strides = [1, 1]} : vector<1x128xf32> to vector<1x32xf32>
    %80 = vector.extract_strided_slice %77 {offsets = [0, 64], sizes = [1, 32], strides = [1, 1]} : vector<1x128xf32> to vector<1x32xf32>
    %81 = vector.extract_strided_slice %77 {offsets = [0, 96], sizes = [1, 32], strides = [1, 1]} : vector<1x128xf32> to vector<1x32xf32>
    %82 = arith.mulf %80, %67 : vector<1x32xf32>
    %83 = arith.mulf %79, %78 : vector<1x32xf32>
    %84 = arith.addf %82, %83 : vector<1x32xf32>
    %85 = math.tanh %84 : vector<1x32xf32>
    %86 = arith.mulf %81, %85 : vector<1x32xf32>
    %87 = vector.extract_strided_slice %5 {offsets = [5, 0], sizes = [1, 128], strides = [1, 1]} : vector<8x128xf32> to vector<1x128xf32>
    %cst_21 = arith.constant dense<0.000000e+00> : vector<1x128xf32>
    %88 = tpu.matmul %86, %6, %cst_21 {dimension_numbers = #tpu.dot_dimension_numbers<[1], [0], [0], [1], [0, 0, 1, 1], [], []>} : vector<1x32xf32>, vector<32x128xf32>, vector<1x128xf32> -> vector<1x128xf32>
    %89 = arith.addf %87, %88 : vector<1x128xf32>
    %90 = math.tanh %89 : vector<1x128xf32>
    %cst_22 = arith.constant 5.000000e-01 : f32
    %91 = vector.broadcast %cst_22 : f32 to vector<1x128xf32>
    %92 = arith.mulf %91, %90 : vector<1x128xf32>
    %cst_23 = arith.constant 5.000000e-01 : f32
    %93 = vector.broadcast %cst_23 : f32 to vector<1x128xf32>
    %94 = arith.addf %92, %93 : vector<1x128xf32>
    %95 = vector.extract_strided_slice %90 {offsets = [0, 0], sizes = [1, 32], strides = [1, 1]} : vector<1x128xf32> to vector<1x32xf32>
    %96 = vector.extract_strided_slice %94 {offsets = [0, 32], sizes = [1, 32], strides = [1, 1]} : vector<1x128xf32> to vector<1x32xf32>
    %97 = vector.extract_strided_slice %94 {offsets = [0, 64], sizes = [1, 32], strides = [1, 1]} : vector<1x128xf32> to vector<1x32xf32>
    %98 = vector.extract_strided_slice %94 {offsets = [0, 96], sizes = [1, 32], strides = [1, 1]} : vector<1x128xf32> to vector<1x32xf32>
    %99 = arith.mulf %97, %84 : vector<1x32xf32>
    %100 = arith.mulf %96, %95 : vector<1x32xf32>
    %101 = arith.addf %99, %100 : vector<1x32xf32>
    %102 = math.tanh %101 : vector<1x32xf32>
    %103 = arith.mulf %98, %102 : vector<1x32xf32>
    %104 = vector.extract_strided_slice %5 {offsets = [6, 0], sizes = [1, 128], strides = [1, 1]} : vector<8x128xf32> to vector<1x128xf32>
    %cst_24 = arith.constant dense<0.000000e+00> : vector<1x128xf32>
    %105 = tpu.matmul %103, %6, %cst_24 {dimension_numbers = #tpu.dot_dimension_numbers<[1], [0], [0], [1], [0, 0, 1, 1], [], []>} : vector<1x32xf32>, vector<32x128xf32>, vector<1x128xf32> -> vector<1x128xf32>
    %106 = arith.addf %104, %105 : vector<1x128xf32>
    %107 = math.tanh %106 : vector<1x128xf32>
    %cst_25 = arith.constant 5.000000e-01 : f32
    %108 = vector.broadcast %cst_25 : f32 to vector<1x128xf32>
    %109 = arith.mulf %108, %107 : vector<1x128xf32>
    %cst_26 = arith.constant 5.000000e-01 : f32
    %110 = vector.broadcast %cst_26 : f32 to vector<1x128xf32>
    %111 = arith.addf %109, %110 : vector<1x128xf32>
    %112 = vector.extract_strided_slice %107 {offsets = [0, 0], sizes = [1, 32], strides = [1, 1]} : vector<1x128xf32> to vector<1x32xf32>
    %113 = vector.extract_strided_slice %111 {offsets = [0, 32], sizes = [1, 32], strides = [1, 1]} : vector<1x128xf32> to vector<1x32xf32>
    %114 = vector.extract_strided_slice %111 {offsets = [0, 64], sizes = [1, 32], strides = [1, 1]} : vector<1x128xf32> to vector<1x32xf32>
    %115 = vector.extract_strided_slice %111 {offsets = [0, 96], sizes = [1, 32], strides = [1, 1]} : vector<1x128xf32> to vector<1x32xf32>
    %116 = arith.mulf %114, %101 : vector<1x32xf32>
    %117 = arith.mulf %113, %112 : vector<1x32xf32>
    %118 = arith.addf %116, %117 : vector<1x32xf32>
    %119 = math.tanh %118 : vector<1x32xf32>
    %120 = arith.mulf %115, %119 : vector<1x32xf32>
    %121 = vector.extract_strided_slice %5 {offsets = [7, 0], sizes = [1, 128], strides = [1, 1]} : vector<8x128xf32> to vector<1x128xf32>
    %cst_27 = arith.constant dense<0.000000e+00> : vector<1x128xf32>
    %122 = tpu.matmul %120, %6, %cst_27 {dimension_numbers = #tpu.dot_dimension_numbers<[1], [0], [0], [1], [0, 0, 1, 1], [], []>} : vector<1x32xf32>, vector<32x128xf32>, vector<1x128xf32> -> vector<1x128xf32>
    %123 = arith.addf %121, %122 : vector<1x128xf32>
    %124 = math.tanh %123 : vector<1x128xf32>
    %cst_28 = arith.constant 5.000000e-01 : f32
    %125 = vector.broadcast %cst_28 : f32 to vector<1x128xf32>
    %126 = arith.mulf %125, %124 : vector<1x128xf32>
    %cst_29 = arith.constant 5.000000e-01 : f32
    %127 = vector.broadcast %cst_29 : f32 to vector<1x128xf32>
    %128 = arith.addf %126, %127 : vector<1x128xf32>
    %129 = vector.extract_strided_slice %124 {offsets = [0, 0], sizes = [1, 32], strides = [1, 1]} : vector<1x128xf32> to vector<1x32xf32>
    %130 = vector.extract_strided_slice %128 {offsets = [0, 32], sizes = [1, 32], strides = [1, 1]} : vector<1x128xf32> to vector<1x32xf32>
    %131 = vector.extract_strided_slice %128 {offsets = [0, 64], sizes = [1, 32], strides = [1, 1]} : vector<1x128xf32> to vector<1x32xf32>
    %132 = vector.extract_strided_slice %128 {offsets = [0, 96], sizes = [1, 32], strides = [1, 1]} : vector<1x128xf32> to vector<1x32xf32>
    %133 = arith.mulf %131, %118 : vector<1x32xf32>
    %134 = arith.mulf %130, %129 : vector<1x32xf32>
    %135 = arith.addf %133, %134 : vector<1x32xf32>
    %136 = math.tanh %135 : vector<1x32xf32>
    %137 = arith.mulf %132, %136 : vector<1x32xf32>
    %cst_30 = arith.constant 0.000000e+00 : f32
    %138 = vector.broadcast %cst_30 : f32 to vector<1x32xf32>
    %139 = arith.maximumf %137, %138 : vector<1x32xf32>
    %c0_31 = arith.constant 0 : index
    %c0_32 = arith.constant 0 : index
    %140 = vector.load %arg4[%c0_31, %c0_32] : memref<32x16xf32, #tpu.memory_space<vmem>>, vector<32x16xf32>
    %cst_33 = arith.constant dense<0.000000e+00> : vector<1x16xf32>
    %141 = tpu.matmul %139, %140, %cst_33 {dimension_numbers = #tpu.dot_dimension_numbers<[1], [0], [0], [1], [0, 0, 1, 1], [], []>} : vector<1x32xf32>, vector<32x16xf32>, vector<1x16xf32> -> vector<1x16xf32>
    %c0_34 = arith.constant 0 : index
    %c0_35 = arith.constant 0 : index
    %142 = vector.load %arg5[%c0_34, %c0_35] : memref<1x16xf32, #tpu.memory_space<vmem>>, vector<1x16xf32>
    %143 = arith.addf %141, %142 : vector<1x16xf32>
    %cst_36 = arith.constant dense<0xFF800000> : vector<1xf32>
    %144 = vector.multi_reduction <maximumf>, %143, %cst_36 [1] : vector<1x16xf32> to vector<1xf32>
    %145 = vector.shape_cast %144 : vector<1xf32> to vector<1x1xf32>
    %146 = vector.broadcast %145 : vector<1x1xf32> to vector<1x16xf32>
    %147 = arith.subf %143, %146 : vector<1x16xf32>
    %148 = math.exp %147 : vector<1x16xf32>
    %cst_37 = arith.constant dense<0.000000e+00> : vector<1xf32>
    %149 = vector.multi_reduction <add>, %148, %cst_37 [1] : vector<1x16xf32> to vector<1xf32>
    %150 = vector.shape_cast %149 : vector<1xf32> to vector<1x1xf32>
    %151 = tpu.reciprocal %150 : vector<1x1xf32> -> vector<1x1xf32>
    %152 = vector.broadcast %151 : vector<1x1xf32> to vector<1x16xf32>
    %153 = arith.mulf %148, %152 : vector<1x16xf32>
    %c0_38 = arith.constant 0 : index
    %c0_39 = arith.constant 0 : index
    %154 = vector.load %arg6[%c0_38, %c0_39] : memref<1x16xf32, #tpu.memory_space<vmem>>, vector<1x16xf32>
    tpu.vector_store %arg6[%c0_38, %c0_39], %153 {strides = array<i32>} : memref<1x16xf32, #tpu.memory_space<vmem>>, vector<1x16xf32>,
    return
  }
}

</mosaic_0001>

<bundles_post_ra>
// kernel: agent_model_forward.1
= control target key start
LH: loop header
LB: loop body
LE: loop exit
PB: predicated region body
PF: predicated region fallthrough
CT: control target
= control target key end

     0   :  { %11 = vsyncpa [#allocation3], 0  ;;  %s1468_s0 = inlined_call_operand.hbm [shape: f32[8,16], index: 0, kind: input, shape index: {}]   ;;  %s1469_s1 = inlined_call_operand.vmem [shape: f32[16,128], index: 1, kind: input, shape index: {}]   ;;  %s1470_s2 = inlined_call_operand.vmem [shape: f32[32,128], index: 2, kind: input, shape index: {}]   ;;  %s1471_s3 = inlined_call_operand.vmem [shape: f32[1,128], index: 3, kind: input, shape index: {}]   ;;  %s1472_s4 = inlined_call_operand.vmem [shape: f32[32,16], index: 4, kind: input, shape index: {}]   ;;  %s1473_s5 = inlined_call_operand.vmem [shape: f32[1,16], index: 5, kind: input, shape index: {}]   ;;  %s1474_s6 = inlined_call_operand.hbm [shape: f32[1,16], index: 6, kind: output, shape index: {}]  }
   0x1   :  { %12 = vsyncpa [#allocation4], 0  ;;  %s1261_s21 = smov [#allocation2]   ;;  %s1213_s25 = scalar_lea.hbm %s1468_s0, 128 }
   0x2   :  { %s19_s22 = sshll.u32 %s1261_s21, 4  ;;  %p1214_p0 = scmp.ne.s32.totalorder %s1468_s0, %s1213_s25  ;;  %s20_s22 = int_to_ptr.vmem [resolvable:$true] %s19_s22 }
   0x3   :  { %p1217_p1 = scmp.lt.u32.totalorder %s1213_s25, %s1468_s0 }
   0x5   :  { %p1219_p2 = pnand %p1217_p1, %p1214_p0 }
   0x7   :  { %1222 = shalt.err (!%p1219_p2)
}
   0x8   :  { %s1223_s30 = scalar_lea.vmem %s20_s22, 128  ;;  %p1228_p4 = scmp.lt.s32.totalorder %s20_s22, %s20_s22 }
   0x9   :  { %p1224_p3 = scmp.ne.s32.totalorder %s20_s22, %s1223_s30  ;;  %p1229_p5 = scmp.lt.s32.totalorder %s1223_s30, %s1223_s30 }
   0xb   :  { %p1230_p6 = por %p1229_p5, %p1228_p4 }
   0xd   :  { %p1231_p7 = pnand %p1230_p6, %p1224_p3 }
   0xf   :  { %1234 = shalt.err (!%p1231_p7)
}
  0x10   :  { %22 = dma.hbm_to_vmem [thread:$0]  %s1468_s0, 128, %s20_s22, [#allocation3]  }
  0x11   :  { %1257 = dma.done.wait [#allocation3], 128  }
  0x12   :  { %1258 = vsyncadd [#allocation3], 4294967168  ;;  %v1262_v0 = vmov 0.0|0.0   ;;  %vm1263_vm0 = vmmov 0   ;;  %v1264_v1 = vmov 0.0   ;;  %v37_v2 = vld [vmem:[%s1469_s1] sm:$0xff] }
  0x13   :  { %1119 = vmatprep.subr.bf16.mxu0 %v1262_v0  ;;  %1028 = vmatprep.mubr.msk.f32.mxu0 %vm1263_vm0, %v1264_v1  ;;  %v38_v3 = vld [vmem:[%s1469_s1 + $0x8] sm:$0xff]  ;;  %v36_v5 = vld [vmem:[#allocation2] sm:$0xff]  ;;  %vm46_vm1 = vcmask 130048   ;;  %s1265_s1 = smov 32   ;;  %v122_v17 = vld [vmem:[%s1470_s2 + $0x10] sm:$0xff]  ;;  %vm141_vm2 = vcmask 261120  }
  0x14   :  { %1122 = vmatprep.subr.bf16.mxu1 %v1262_v0  ;;  %1039 = vmatprep.mubr.msk.f32.mxu1 %vm1263_vm0, %v1264_v1  ;;  %v1120_v4 = vpack.c.bf16 %v38_v3, %v37_v2  ;;  %v971_v6 = vld [vmem:[%s1471_s3] ss:$0 sm:$0xff]  ;;  %v121_v16 = vld [vmem:[%s1470_s2 + $0x8] sm:$0xff]  ;;  %v123_v19 = vld [vmem:[%s1470_s2 + $0x18] sm:$0xff]  ;;  %vm943_vm3 = vcmask 122880  }
  0x15   :  { %v120_v15 = vld [vmem:[%s1470_s2] sm:$0xff]  ;;  %v1352_v20 = vpack.c.bf16 %v123_v19, %v122_v17  ;;  %s1266_s2 = smov 64  }
  0x16   :  { %1121 = vmatpush3.bf16.msra.mxu0 %v1120_v4  ;;  %v1346_v18 = vpack.c.bf16 %v121_v16, %v120_v15 }
  0x17   :  { %1128 = vmatprep.subr.bf16.mxu0 %v1262_v0 }
  0x18   :  { %1124 = vmatpush3.bf16.msra.mxu1 %v1346_v18 }
  0x19   :  { %1029 = vmatmul.mubr.msk.f32.vlgmr.msra.gmra.mrb[0].mxu0 %vm46_vm1, %v36_v5  ;;  %1125 = vmatprep.subr.bf16.mxu1 %v1262_v0 }
  0x1a   :  { %1050 = vmatprep.mubr.msk.f32.mxu0 %vm1263_vm0, %v1264_v1  ;;  %1130 = vmatpush3.bf16.msra.mxu0 %v1346_v18 }
  0x1b   :  { %1131 = vmatprep.subr.bf16.mxu0 %v1262_v0 }
  0x1c   :  { %1127 = vmatpush3.bf16.msra.mxu1 %v1352_v20 }
  0x1d   :  { %1134 = vmatprep.subr.bf16.mxu1 %v1262_v0 }
  0x1e   :  { %1133 = vmatpush3.bf16.msra.mxu0 %v1352_v20 }
  0x1f   :  { %1140 = vmatprep.subr.bf16.mxu0 %v1262_v0 }
  0xec   :  { %v116_v7 = vpop.f32.mrb[0].mxu0 }
  0xed   :  { %v1333_v8 = vadd.f32 %v971_v6, %v116_v7  ;;  %v1030_v9 = vpop.f32.mrb[1].mxu0 }
  0xef   :  { %1177 = vtanh.f32 %v1333_v8 }
  0xf9   :  { %v1178_v10 = vpop.eup %1177 }
  0xfa   :  { %128 = vrot.lane.b32.xlu0 %v1178_v10, %s1265_s1  ;;  %v125_v11 = vmul.f32 0.5, %v1178_v10 }
  0xfc   :  { %v126_v12 = vadd.f32 0.5, %v125_v11 }
 0x16c   :  { %v129_v13 = vpop.permute.xlu0 %128 }
 0x16d   :  { %v131_v14 = vmul.f32 %v129_v13, %v126_v12 }
 0x16f   :  { %1179 = vtanh.f32 %v131_v14  ;;  %v222_v22 = vrot.slane %v131_v14, 7 }
 0x179   :  { %v1180_v21 = vpop.eup %1179 }
 0x17a   :  { %134 = vrot.lane.b32.xlu0 %v1180_v21, %s1266_s2 }
 0x17e   :  { %223 = vrot.lane.b32.xlu0 %v222_v22, %s1265_s1 }
 0x1ec   :  { %v135_v23 = vpop.permute.xlu0 %134 }
 0x1ed   :  { %v137_v24 = vmul.f32 %v135_v23, %v126_v12 }
 0x1ef   :  { %139 = vrot.lane.b32.xlu1 %v137_v24, %s1265_s1 }
 0x1f0   :  { %v224_v35 = vpop.permute.xlu0 %223 }
 0x261   :  { %v140_v25 = vpop.permute.xlu1 %139 }
 0x262   :  { %1040 = vmatmul.mubr.msk.f32.vlgmr.msra.gmra.mrb[0].mxu1 %vm141_vm2, %v140_v25 }
 0x263   :  { %1136 = vmatpush3.bf16.msra.mxu1 %v1346_v18  ;;  %1061 = vmatprep.mubr.msk.f32.mxu1 %vm1263_vm0, %v1264_v1 }
 0x264   :  { %1137 = vmatprep.subr.bf16.mxu1 %v1262_v0 }
 0x267   :  { %1139 = vmatpush3.bf16.msra.mxu1 %v1352_v20 }
 0x268   :  { %1146 = vmatprep.subr.bf16.mxu1 %v1262_v0 }
 0x335   :  { %v210_v26 = vpop.f32.mrb[0].mxu1 }
 0x336   :  { %v215_v27 = vrot.slane %v210_v26, 7  ;;  %v1041_v28 = vpop.f32.mrb[1].mxu1 }
 0x338   :  { %v217_v29 = vadd.f32 %v215_v27, %v1333_v8 }
 0x33a   :  { %1181 = vtanh.f32 %v217_v29 }
 0x344   :  { %v1182_v30 = vpop.eup %1181 }
 0x345   :  { %228 = vrot.lane.b32.xlu1 %v1182_v30, %s1265_s1  ;;  %v219_v31 = vmul.f32 0.5, %v1182_v30 }
 0x347   :  { %v220_v32 = vadd.f32 0.5, %v219_v31 }
 0x349   :  { %v226_v36 = vmul.f32 %v224_v35, %v220_v32 }
 0x3b7   :  { %v229_v33 = vpop.permute.xlu1 %228 }
 0x3b8   :  { %v231_v34 = vmul.f32 %v229_v33, %v220_v32 }
 0x3ba   :  { %233 = vrot.lane.b32.xlu1 %v231_v34, %s1265_s1 }
 0x42c   :  { %v234_v37 = vpop.permute.xlu1 %233 }
 0x42d   :  { %v236_v38 = vadd.f32 %v234_v37, %v226_v36 }
 0x42f   :  { %1183 = vtanh.f32 %v236_v38  ;;  %v327_v53 = vrot.slane %v236_v38, 7 }
 0x439   :  { %v1184_v39 = vpop.eup %1183 }
 0x43a   :  { %239 = vrot.lane.b32.xlu0 %v1184_v39, %s1265_s1 }
 0x4ac   :  { %v240_v40 = vpop.permute.xlu0 %239 }
 0x4ad   :  { %v242_v41 = vmul.f32 %v240_v40, %v220_v32 }
 0x4af   :  { %v244_v42 = vrot.slane %v242_v41, 1 }
 0x4b1   :  { %245 = vrot.lane.b32.xlu1 %v244_v42, %s1265_s1 }
 0x523   :  { %v246_v43 = vpop.permute.xlu1 %245 }
 0x524   :  { %1051 = vmatmul.mubr.msk.f32.vlgmr.msra.gmra.mrb[2].mxu0 %vm141_vm2, %v246_v43 }
 0x525   :  { %1142 = vmatpush3.bf16.msra.mxu0 %v1346_v18  ;;  %1072 = vmatprep.mubr.msk.f32.mxu0 %vm1263_vm0, %v1264_v1 }
 0x526   :  { %1143 = vmatprep.subr.bf16.mxu0 %v1262_v0 }
 0x529   :  { %1145 = vmatpush3.bf16.msra.mxu0 %v1352_v20 }
 0x52a   :  { %1152 = vmatprep.subr.bf16.mxu0 %v1262_v0 }
 0x5f7   :  { %v315_v44 = vpop.f32.mrb[2].mxu0 }
 0x5f8   :  { %v320_v45 = vrot.slane %v315_v44, 6  ;;  %v1052_v46 = vpop.f32.mrb[3].mxu0 }
 0x5fa   :  { %v322_v47 = vadd.f32 %v320_v45, %v1333_v8 }
 0x5fc   :  { %1185 = vtanh.f32 %v322_v47 }
 0x606   :  { %v1186_v48 = vpop.eup %1185 }
 0x607   :  { %331 = vrot.lane.b32.xlu0 %v1186_v48, %s1265_s1  ;;  %v324_v49 = vmul.f32 0.5, %v1186_v48 }
 0x609   :  { %v325_v50 = vadd.f32 0.5, %v324_v49 }
 0x60b   :  { %v329_v54 = vmul.f32 %v327_v53, %v325_v50 }
 0x679   :  { %v332_v51 = vpop.permute.xlu0 %331 }
 0x67a   :  { %v334_v52 = vmul.f32 %v332_v51, %v325_v50 }
 0x67c   :  { %336 = vrot.lane.b32.xlu1 %v334_v52, %s1265_s1 }
 0x6ee   :  { %v337_v55 = vpop.permute.xlu1 %336 }
 0x6ef   :  { %v339_v56 = vadd.f32 %v337_v55, %v329_v54 }
 0x6f1   :  { %1187 = vtanh.f32 %v339_v56  ;;  %v430_v10 = vrot.slane %v339_v56, 7 }
 0x6fb   :  { %v1188_v57 = vpop.eup %1187 }
 0x6fc   :  { %342 = vrot.lane.b32.xlu0 %v1188_v57, %s1265_s1 }
 0x76e   :  { %v343_v58 = vpop.permute.xlu0 %342 }
 0x76f   :  { %v345_v59 = vmul.f32 %v343_v58, %v325_v50 }
 0x771   :  { %v347_v60 = vrot.slane %v345_v59, 2 }
 0x773   :  { %348 = vrot.lane.b32.xlu1 %v347_v60, %s1265_s1 }
 0x7e5   :  { %v349_v61 = vpop.permute.xlu1 %348 }
 0x7e6   :  { %1062 = vmatmul.mubr.msk.f32.vlgmr.msra.gmra.mrb[2].mxu1 %vm141_vm2, %v349_v61 }
 0x7e7   :  { %1148 = vmatpush3.bf16.msra.mxu1 %v1346_v18  ;;  %1083 = vmatprep.mubr.msk.f32.mxu1 %vm1263_vm0, %v1264_v1 }
 0x7e8   :  { %1149 = vmatprep.subr.bf16.mxu1 %v1262_v0 }
 0x7eb   :  { %1151 = vmatpush3.bf16.msra.mxu1 %v1352_v20 }
 0x7ec   :  { %1158 = vmatprep.subr.bf16.mxu1 %v1262_v0 }
 0x8b9   :  { %v418_v62 = vpop.f32.mrb[2].mxu1 }
 0x8ba   :  { %v423_v63 = vrot.slane %v418_v62, 5  ;;  %v1063_v2 = vpop.f32.mrb[3].mxu1 }
 0x8bc   :  { %v425_v3 = vadd.f32 %v423_v63, %v1333_v8 }
 0x8be   :  { %1189 = vtanh.f32 %v425_v3 }
 0x8c8   :  { %v1190_v4 = vpop.eup %1189 }
 0x8c9   :  { %434 = vrot.lane.b32.xlu0 %v1190_v4, %s1265_s1  ;;  %v427_v5 = vmul.f32 0.5, %v1190_v4 }
 0x8cb   :  { %v428_v6 = vadd.f32 0.5, %v427_v5 }
 0x8cd   :  { %v432_v11 = vmul.f32 %v430_v10, %v428_v6 }
 0x93b   :  { %v435_v7 = vpop.permute.xlu0 %434 }
 0x93c   :  { %v437_v9 = vmul.f32 %v435_v7, %v428_v6 }
 0x93e   :  { %439 = vrot.lane.b32.xlu1 %v437_v9, %s1265_s1 }
 0x9b0   :  { %v440_v12 = vpop.permute.xlu1 %439 }
 0x9b1   :  { %v442_v13 = vadd.f32 %v440_v12, %v432_v11 }
 0x9b3   :  { %1191 = vtanh.f32 %v442_v13  ;;  %v533_v30 = vrot.slane %v442_v13, 7 }
 0x9bd   :  { %v1192_v14 = vpop.eup %1191 }
 0x9be   :  { %445 = vrot.lane.b32.xlu0 %v1192_v14, %s1265_s1 }
 0xa30   :  { %v446_v15 = vpop.permute.xlu0 %445 }
 0xa31   :  { %v448_v16 = vmul.f32 %v446_v15, %v428_v6 }
 0xa33   :  { %v450_v17 = vrot.slane %v448_v16, 3 }
 0xa35   :  { %451 = vrot.lane.b32.xlu1 %v450_v17, %s1265_s1 }
 0xaa7   :  { %v452_v19 = vpop.permute.xlu1 %451 }
 0xaa8   :  { %1073 = vmatmul.mubr.msk.f32.vlgmr.msra.gmra.mrb[4].mxu0 %vm141_vm2, %v452_v19 }
 0xaa9   :  { %1154 = vmatpush3.bf16.msra.mxu0 %v1346_v18  ;;  %1094 = vmatprep.mubr.msk.f32.mxu0 %vm1263_vm0, %v1264_v1 }
 0xaaa   :  { %1155 = vmatprep.subr.bf16.mxu0 %v1262_v0 }
 0xaad   :  { %1157 = vmatpush3.bf16.msra.mxu0 %v1352_v20 }
 0xaae   :  { %1164 = vmatprep.subr.bf16.mxu0 %v1262_v0 }
 0xb7b   :  { %v521_v21 = vpop.f32.mrb[4].mxu0 }
 0xb7c   :  { %v526_v22 = vrot.slane %v521_v21, 4  ;;  %v1074_v23 = vpop.f32.mrb[5].mxu0 }
 0xb7e   :  { %v528_v24 = vadd.f32 %v526_v22, %v1333_v8 }
 0xb80   :  { %1193 = vtanh.f32 %v528_v24 }
 0xb8a   :  { %v1194_v25 = vpop.eup %1193 }
 0xb8b   :  { %537 = vrot.lane.b32.xlu0 %v1194_v25, %s1265_s1  ;;  %v530_v26 = vmul.f32 0.5, %v1194_v25 }
 0xb8d   :  { %v531_v27 = vadd.f32 0.5, %v530_v26  ;;  %v862_v26 = vld [vmem:[%s1472_s4] sm:$0xff] }
 0xb8f   :  { %v535_v31 = vmul.f32 %v533_v30, %v531_v27 }
 0xbfd   :  { %v538_v28 = vpop.permute.xlu0 %537 }
 0xbfe   :  { %v540_v29 = vmul.f32 %v538_v28, %v531_v27 }
 0xc00   :  { %542 = vrot.lane.b32.xlu1 %v540_v29, %s1265_s1  ;;  %v865_v29 = vld [vmem:[%s1472_s4 + $0x18] sm:$0xff] }
 0xc72   :  { %v543_v32 = vpop.permute.xlu1 %542 }
 0xc73   :  { %v545_v33 = vadd.f32 %v543_v32, %v535_v31 }
 0xc75   :  { %1195 = vtanh.f32 %v545_v33  ;;  %v636_v47 = vrot.slane %v545_v33, 7 }
 0xc7f   :  { %v1196_v34 = vpop.eup %1195 }
 0xc80   :  { %548 = vrot.lane.b32.xlu0 %v1196_v34, %s1265_s1 }
 0xcf2   :  { %v549_v35 = vpop.permute.xlu0 %548 }
 0xcf3   :  { %v551_v36 = vmul.f32 %v549_v35, %v531_v27  ;;  %v864_v27 = vld [vmem:[%s1472_s4 + $0x10] sm:$0xff] }
 0xcf4   :  { %v1168_v30 = vpack.c.bf16 %v865_v29, %v864_v27 }
 0xcf5   :  { %v553_v37 = vrot.slane %v551_v36, 4 }
 0xcf7   :  { %554 = vrot.lane.b32.xlu1 %v553_v37, %s1265_s1  ;;  %v866_v37 = vld [vmem:[%s1473_s5] sm:$0x1] }
 0xd69   :  { %v555_v38 = vpop.permute.xlu1 %554 }
 0xd6a   :  { %1084 = vmatmul.mubr.msk.f32.vlgmr.msra.gmra.mrb[4].mxu1 %vm141_vm2, %v555_v38 }
 0xd6b   :  { %1160 = vmatpush3.bf16.msra.mxu1 %v1346_v18  ;;  %1105 = vmatprep.mubr.msk.f32.mxu1 %vm1263_vm0, %v1264_v1 }
 0xd6c   :  { %1161 = vmatprep.subr.bf16.mxu1 %v1262_v0 }
 0xd6f   :  { %1163 = vmatpush3.bf16.msra.mxu1 %v1352_v20 }
 0xe3d   :  { %v624_v39 = vpop.f32.mrb[4].mxu1 }
 0xe3e   :  { %v629_v40 = vrot.slane %v624_v39, 3  ;;  %v1085_v41 = vpop.f32.mrb[5].mxu1 }
 0xe40   :  { %v631_v42 = vadd.f32 %v629_v40, %v1333_v8 }
 0xe42   :  { %1197 = vtanh.f32 %v631_v42 }
 0xe4c   :  { %v1198_v43 = vpop.eup %1197 }
 0xe4d   :  { %640 = vrot.lane.b32.xlu0 %v1198_v43, %s1265_s1  ;;  %v633_v44 = vmul.f32 0.5, %v1198_v43 }
 0xe4f   :  { %v634_v45 = vadd.f32 0.5, %v633_v44 }
 0xe51   :  { %v638_v48 = vmul.f32 %v636_v47, %v634_v45 }
 0xebf   :  { %v641_v46 = vpop.permute.xlu0 %640 }
 0xec0   :  { %v643_v18 = vmul.f32 %v641_v46, %v634_v45 }
 0xec2   :  { %645 = vrot.lane.b32.xlu1 %v643_v18, %s1265_s1 }
 0xf34   :  { %v646_v49 = vpop.permute.xlu1 %645 }
 0xf35   :  { %v648_v50 = vadd.f32 %v646_v49, %v638_v48 }
 0xf37   :  { %1199 = vtanh.f32 %v648_v50  ;;  %v739_v2 = vrot.slane %v648_v50, 7 }
 0xf41   :  { %v1200_v20 = vpop.eup %1199 }
 0xf42   :  { %651 = vrot.lane.b32.xlu0 %v1200_v20, %s1265_s1 }
 0xfb4   :  { %v652_v51 = vpop.permute.xlu0 %651 }
 0xfb5   :  { %v654_v52 = vmul.f32 %v652_v51, %v634_v45 }
 0xfb7   :  { %v656_v53 = vrot.slane %v654_v52, 5 }
 0xfb9   :  { %657 = vrot.lane.b32.xlu1 %v656_v53, %s1265_s1 }
0x102b   :  { %v658_v54 = vpop.permute.xlu1 %657 }
0x102c   :  { %1095 = vmatmul.mubr.msk.f32.vlgmr.msra.gmra.mrb[6].mxu0 %vm141_vm2, %v658_v54 }
0x102d   :  { %1116 = vmatprep.mubr.msk.f32.mxu0 %vm1263_vm0, %v1264_v1 }
0x10ff   :  { %v727_v55 = vpop.f32.mrb[6].mxu0 }
0x1100   :  { %v732_v56 = vrot.slane %v727_v55, 2  ;;  %v1096_v57 = vpop.f32.mrb[7].mxu0 }
0x1102   :  { %v734_v58 = vadd.f32 %v732_v56, %v1333_v8 }
0x1104   :  { %1201 = vtanh.f32 %v734_v58 }
0x110e   :  { %v1202_v59 = vpop.eup %1201 }
0x110f   :  { %743 = vrot.lane.b32.xlu0 %v1202_v59, %s1265_s1  ;;  %v736_v60 = vmul.f32 0.5, %v1202_v59 }
0x1111   :  { %v737_v61 = vadd.f32 0.5, %v736_v60 }
0x1113   :  { %v741_v3 = vmul.f32 %v739_v2, %v737_v61 }
0x1181   :  { %v744_v62 = vpop.permute.xlu0 %743 }
0x1182   :  { %v746_v63 = vmul.f32 %v744_v62, %v737_v61 }
0x1184   :  { %748 = vrot.lane.b32.xlu1 %v746_v63, %s1265_s1 }
0x11f6   :  { %v749_v4 = vpop.permute.xlu1 %748 }
0x11f7   :  { %v751_v5 = vadd.f32 %v749_v4, %v741_v3 }
0x11f9   :  { %1203 = vtanh.f32 %v751_v5  ;;  %v842_v22 = vrot.slane %v751_v5, 7 }
0x1203   :  { %v1204_v1 = vpop.eup %1203 }
0x1204   :  { %754 = vrot.lane.b32.xlu0 %v1204_v1, %s1265_s1 }
0x1276   :  { %v755_v6 = vpop.permute.xlu0 %754 }
0x1277   :  { %v757_v7 = vmul.f32 %v755_v6, %v737_v61 }
0x1279   :  { %v759_v9 = vrot.slane %v757_v7, 6 }
0x127b   :  { %760 = vrot.lane.b32.xlu1 %v759_v9, %s1265_s1 }
0x12ed   :  { %v761_v10 = vpop.permute.xlu1 %760 }
0x12ee   :  { %1106 = vmatmul.mubr.msk.f32.vlgmr.msra.gmra.mrb[6].mxu1 %vm141_vm2, %v761_v10 }
0x13c1   :  { %v830_v11 = vpop.f32.mrb[6].mxu1 }
0x13c2   :  { %v835_v12 = vrot.slane %v830_v11, 1  ;;  %v1107_v13 = vpop.f32.mrb[7].mxu1 }
0x13c4   :  { %v837_v14 = vadd.f32 %v835_v12, %v1333_v8  ;;  %v863_v8 = vld [vmem:[%s1472_s4 + $0x8] sm:$0xff]  ;;  %s1267_s4 = smov [#allocation5]  }
0x13c5   :  { %v1165_v28 = vpack.c.bf16 %v863_v8, %v862_v26  ;;  %s962_s7 = sshll.u32 %s1267_s4, 4  ;;  %s963_s7 = int_to_ptr.vmem [resolvable:$true] %s962_s7 }
0x13c6   :  { %1205 = vtanh.f32 %v837_v14  ;;  %s1235_s5 = scalar_lea.vmem %s963_s7, 16  ;;  %s1239_s8 = scalar_lea.vmem %s963_s7, 32 }
0x13c7   :  { %1166 = vmatpush3.bf16.msra.mxu0 %v1165_v28  ;;  %p1236_p8 = scmp.ne.s32.totalorder %s963_s7, %s1235_s5  ;;  %p1240_p9 = scmp.lt.s32.totalorder %s963_s7, %s963_s7 }
0x13c8   :  { %1167 = vmatprep.subr.bf16.mxu0 %v1262_v0  ;;  %p1241_p10 = scmp.lt.s32.totalorder %s1239_s8, %s1235_s5 }
0x13ca   :  { %p1242_p11 = por %p1241_p10, %p1240_p9 }
0x13cb   :  { %1169 = vmatpush3.bf16.msra.mxu0 %v1168_v30 }
0x13cc   :  { %p1243_p12 = pnand %p1242_p11, %p1236_p8 }
0x13d0   :  { %v1206_v15 = vpop.eup %1205 }
0x13d1   :  { %846 = vrot.lane.b32.xlu0 %v1206_v15, %s1265_s1  ;;  %v839_v16 = vmul.f32 0.5, %v1206_v15 }
0x13d3   :  { %v840_v17 = vadd.f32 0.5, %v839_v16 }
0x13d5   :  { %v844_v23 = vmul.f32 %v842_v22, %v840_v17 }
0x1443   :  { %v847_v19 = vpop.permute.xlu0 %846 }
0x1444   :  { %v849_v21 = vmul.f32 %v847_v19, %v840_v17 }
0x1446   :  { %851 = vrot.lane.b32.xlu1 %v849_v21, %s1265_s1 }
0x14b8   :  { %v852_v24 = vpop.permute.xlu1 %851 }
0x14b9   :  { %v854_v25 = vadd.f32 %v852_v24, %v844_v23 }
0x14bb   :  { %1207 = vtanh.f32 %v854_v25 }
0x14c5   :  { %v1208_v31 = vpop.eup %1207 }
0x14c6   :  { %857 = vrot.lane.b32.xlu0 %v1208_v31, %s1265_s1 }
0x1538   :  { %v858_v32 = vpop.permute.xlu0 %857 }
0x1539   :  { %v860_v33 = vmul.f32 %v858_v32, %v840_v17 }
0x153b   :  { %v861_v34 = vmax.f32 %v860_v33, 0.0 }
0x153d   :  { %v868_v35 = vrot.slane %v861_v34, 7 }
0x153f   :  { %869 = vrot.lane.b32.xlu1 %v868_v35, %s1265_s1 }
0x15b1   :  { %v870_v36 = vpop.permute.xlu1 %869 }
0x15b2   :  { %1117 = vmatmul.mubr.msk.f32.vlgmr.msra.gmra.mrb[8].mxu0 %vm141_vm2, %v870_v36 }
0x1685   :  { %v939_v38 = vpop.f32.mrb[8].mxu0 }
0x1686   :  { %v940_v0 = vadd.f32 %v939_v38, %v866_v37  ;;  %v1118_v39 = vpop.f32.mrb[9].mxu0 }
0x1688   :  { %v944_v40 = vsel %vm943_vm3, %v940_v0, -inf }
0x1689   :  { %945 = vmax.xlane.f32.xlu0 %v944_v40 }
0x1716   :  { %v946_v41 = vpop.xlane.xlu0 %945 }
0x1717   :  { %v947_v42 = vsub.f32 %v940_v0, %v946_v41 }
0x1719   :  { %v948_v43 = vmul.f32 1.442695, %v947_v42 }
0x171b   :  { %1209 = vpow2.f32 %v948_v43 }
0x1725   :  { %v1210_v44 = vpop.eup %1209 }
0x1726   :  { %v950_v45 = vsel %vm943_vm3, %v1210_v44, 0.0 }
0x1727   :  { %951 = vadd.xlane.f32.xlu1 %v950_v45 }
0x17b4   :  { %v952_v46 = vpop.xlane.xlu1 %951 }
0x17b5   :  { %1211 = vrcp.f32 %v952_v46 }
0x17bf   :  { %v1212_v18 = vpop.eup %1211 }
0x17c0   :  { %v954_v47 = vmul.f32 %v1212_v18, %v1210_v44 }
0x17c2   :  { %955 = vst.msk [vmem:[#allocation5] sm:$0x1] %vm943_vm3, %v954_v47 }
0x17c3   :  { %1246 = shalt.err (!%p1243_p12)
}
0x17c4   :  { %s1247_s0 = scalar_lea.hbm %s1474_s6, 16 }
0x17c5   :  { %p1248_p13 = scmp.ne.s32.totalorder %s1474_s6, %s1247_s0  ;;  %p1251_p0 = scmp.lt.u32.totalorder %s1247_s0, %s1474_s6 }
0x17c7   :  { %p1253_p1 = pnand %p1251_p0, %p1248_p13 }
0x17c9   :  { %1256 = shalt.err (!%p1253_p1)
}
0x17ca   :  { %965 = dma.vmem_to_hbm [thread:$0]  %s963_s7, 16, %s1474_s6, [#allocation4]  }
0x17cb   :  { %1259 = dma.done.wait [#allocation4], 16  }
0x17cc   :  { %1260 = vsyncadd [#allocation4], 4294967280 }
0x17cd   :  { %969 = vsyncpa [#allocation3], 1 }
0x17ce   :  { %970 = vsyncpa [#allocation4], 1 }

</bundles_post_ra>
